<compile_context>
chip_gen: v7x
topology: tpu7x:2x2x1
jax: 0.10.0
libtpu: 0.0.40
codegen_flags: <defaults>
</compile_context>

<pallas_src>
import jax
import jax.numpy as jnp
from jax import lax
from jax.experimental import pallas as pl
from jax.experimental.pallas import tpu as pltpu

_LANE = 128
_SMOOTH = 1e-05


def _round_up(a, b):
    return -(-a // b) * b


def _make_dice_kernel(n_classes, tr, ch, rt_half, hw, need_mask, do_softmax):
    n_chunks = tr // ch
    acc_rows = 8 if ch % 8 == 0 else 1

    def _rsum(v):
        # (ch, 128) -> (acc_rows, 128); pure vreg adds when ch % 8 == 0.
        if ch % 8 == 0:
            if ch == 8:
                return v
            return jnp.sum(v.reshape(ch // 8, 8, _LANE), axis=0)
        return jnp.sum(v, axis=0, keepdims=True)

    def kernel(score_ref, label_ref, out_ref):
        # score_ref: (C, tr, 128)    label_ref: (tr, 128)
        # out_ref:   (3, C, 8, 128)  resident partial-sum accumulator (per split)
        p = pl.program_id(0)          # spatial split      (parallel, v7x megacore)
        n = pl.program_id(1)          # sample             (reduction)
        r = pl.program_id(2)          # spatial tile       (reduction, innermost)

        @pl.when((n == 0) & (r == 0))
        def _init():
            out_ref[...] = jnp.zeros_like(out_ref)

        row0 = (p * rt_half + r) * tr     # first global spatial row of this block

        def process_chunk(base):
            lbl = label_ref[pl.ds(base, ch), :]                      # (ch, 128)

            if need_mask:
                rid = lax.broadcasted_iota(jnp.int32, (ch, _LANE), 0)
                lid = lax.broadcasted_iota(jnp.int32, (ch, _LANE), 1)
                flat = (row0 + base + rid) * _LANE + lid
                valid = flat < hw
            else:
                valid = None

            if do_softmax:
                s = score_ref[:, pl.ds(base, ch), :].astype(jnp.float32)  # (C,ch,128)
                s = jnp.exp(s - jnp.max(s, axis=0, keepdims=True))
                s = s / jnp.sum(s, axis=0, keepdims=True)

            for c in range(n_classes):
                if do_softmax:
                    sc = s[c]
                else:
                    sc = score_ref[c, pl.ds(base, ch), :].astype(jnp.float32)
                m = lbl == c                       # on-the-fly one-hot row
                if valid is not None:
                    sc = jnp.where(valid, sc, 0.0)
                    m = jnp.logical_and(m, valid)
                mf = m.astype(jnp.float32)
                out_ref[0, c, :acc_rows, :] += _rsum(mf * sc)   # sum(score * onehot)
                out_ref[1, c, :acc_rows, :] += _rsum(mf)        # sum(onehot^2)
                out_ref[2, c, :acc_rows, :] += _rsum(sc * sc)   # sum(score^2)

        if n_chunks <= 4:
            for jj in range(n_chunks):
                process_chunk(jj * ch)
        else:
            def body(j, carry):
                process_chunk(pl.multiple_of(j * ch, ch))
                return carry
            lax.fori_loop(0, n_chunks, body, 0)

    return kernel


def dice_loss(inputs, target, n_classes, weight=None, softmax=False):
    """Pallas TPU implementation of DiceLoss.forward.

    inputs: (N, C, H, W) float scores (probabilities unless softmax=True)
    target: (N, 1, H, W) class labels (float or int)
    """
    N, C, H, W = inputs.shape
    assert C == n_classes, "predict & target shape do not match"
    assert target.shape == (N, 1, H, W)

    if weight is None:
        weight = [1.0] * n_classes
    weight = jnp.asarray(weight, dtype=jnp.float32)
    assert weight.shape == (n_classes,)

    hw = H * W
    rows0 = -(-hw // _LANE)                       # cdiv(H*W, 128)

    if rows0 * _LANE == hw:
        # Contiguous NCHW: free, layout-preserving reshape (no copy, no pad).
        score = inputs.reshape(N, C, rows0, _LANE)
        labels = target.reshape(N, 1, rows0, _LANE)
    else:
        # TODO(synk): ragged H*W still needs one padded copy to reach a 128-lane
        # layout; the pad region is discarded by the in-kernel validity mask.
        pad = rows0 * _LANE - hw
        score = jnp.pad(inputs.reshape(N, C, hw), ((0, 0), (0, 0), (0, pad)))
        labels = jnp.pad(target.reshape(N, 1, hw), ((0, 0), (0, 0), (0, pad)),
                         constant_values=-1)
        score = score.reshape(N, C, rows0, _LANE)
        labels = labels.reshape(N, 1, rows0, _LANE)

    score_bytes = jnp.dtype(score.dtype).itemsize
    label_bytes = jnp.dtype(labels.dtype).itemsize

    # ---- spatial tile (tr rows x 128 lanes), <= ~6 MiB of double-buffered blocks
    bytes_per_row = _LANE * (C * score_bytes + label_bytes)
    if rows0 < 8:
        tr = rows0                                 # tiny image: full-dim block
    else:
        cap = max(64, min(1024, ((6 << 20) // (2 * bytes_per_row)) // 64 * 64))
        min_tiles = max(2, -(-4 // N))             # >=2 spatial tiles (v7x split)
        desired = _round_up(-(-rows0 // min_tiles), 8)
        tr = max(8, min(cap, desired, (rows0 // 8) * 8))

    rt = -(-rows0 // tr)                           # real spatial tiles
    num_splits = 2 if rt >= 2 else 1               # v7x megacore split
    rt_half = -(-rt // num_splits)
    need_mask = (num_splits * rt_half * tr * _LANE) != hw

    # inner chunk rows (multiple of 8 dividing tr); cap live set when softmax fused
    if tr < 8:
        ch = tr
    else:
        ch_cap = 64
        if softmax:
            ch_cap = min(ch_cap, max(8, ((256 // max(C, 1)) // 8) * 8))
        ch = 8
        for cand in (64, 32, 16, 8):
            if cand <= ch_cap and tr % cand == 0:
                ch = cand
                break

    kernel = _make_dice_kernel(n_classes, tr, ch, rt_half, hw, need_mask, softmax)

    # Clamp the spatial block index so an odd split never produces a fully
    # out-of-bounds block; the validity mask zeroes any re-read data.
    def _score_map(p, n, r):
        return (n, 0, jnp.minimum(p * rt_half + r, rt - 1), 0)

    def _label_map(p, n, r):
        return (n, 0, jnp.minimum(p * rt_half + r, rt - 1), 0)

    parts = pl.pallas_call(
        kernel,
        out_shape=jax.ShapeDtypeStruct((num_splits, 3, n_classes, 8, _LANE),
                                       jnp.float32),
        grid_spec=pltpu.PrefetchScalarGridSpec(
            num_scalar_prefetch=0,
            grid=(num_splits, N, rt_half),
            in_specs=[
                # all C classes of sample n, spatial rows [tile*tr, tile*tr+tr)
                pl.BlockSpec((pl.Squeezed(), C, tr, _LANE), _score_map),
                # shared label tile for sample n (channel 0), read once per tile
                pl.BlockSpec((pl.Squeezed(), pl.Squeezed(), tr, _LANE), _label_map),
            ],
            # resident lane-dense partial-sum accumulator, one slab per split
            out_specs=pl.BlockSpec((pl.Squeezed(), 3, n_classes, 8, _LANE),
                                   lambda p, n, r: (p, 0, 0, 0, 0)),
        ),
        compiler_params=pltpu.CompilerParams(
            dimension_semantics=("parallel", "arbitrary", "arbitrary")),
    )(score, labels)

    # Tiny epilogue: combine splits, finish cross-lane reduction, dice + weights.
    sums = jnp.sum(parts, axis=(0, 3, 4))          # (3, C)
    intersect, y_sum, z_sum = sums[0], sums[1], sums[2]
    dice = 1.0 - (2.0 * intersect + _SMOOTH) / (z_sum + y_sum + _SMOOTH)
    return jnp.sum(dice * weight) / n_classes


def _reference_dice_loss(inputs, target, n_classes, weight=None, softmax=False):
    """Pure-JAX reference mirroring the PyTorch module."""
    if softmax:
        inputs = jax.nn.softmax(inputs, axis=1)
    onehot = jnp.concatenate(
        [(target == i).astype(jnp.float32) for i in range(n_classes)], axis=1)
    if weight is None:
        weight = [1.0] * n_classes
    smooth = 1e-05
    loss = 0.0
    for i in range(n_classes):
        s = inputs[:, i].astype(jnp.float32)
        t = onehot[:, i]
        intersect = jnp.sum(s * t)
        y_sum = jnp.sum(t * t)
        z_sum = jnp.sum(s * s)
        dice = 1.0 - (2.0 * intersect + smooth) / (z_sum + y_sum + smooth)
        loss = loss + dice * weight[i]
    return loss / n_classes


if __name__ == "__main__":
    key = jax.random.PRNGKey(0)
    k1, k2 = jax.random.split(key)

    # Small NCHW test consistent with the module: (N,C,H,W) scores + (N,1,H,W) labels.
    N, C, H, W = 2, 4, 16, 16
    logits = jax.random.normal(k1, (N, C, H, W), dtype=jnp.float32)
    target = jax.random.randint(k2, (N, 1, H, W), 0, C).astype(jnp.float32)

    # Fused in-kernel softmax path.
    out = jax.block_until_ready(dice_loss(logits, target, n_classes=C, softmax=True))
    ref = _reference_dice_loss(logits, target, n_classes=C, softmax=True)
    assert jnp.allclose(out, ref, rtol=1e-5, atol=1e-5), (out, ref)

    # Probabilities-in (no softmax) path.
    probs = jax.nn.softmax(logits, axis=1)
    out2 = jax.block_until_ready(dice_loss(probs, target, n_classes=C, softmax=False))
    ref2 = _reference_dice_loss(probs, target, n_classes=C, softmax=False)
    assert jnp.allclose(out2, ref2, rtol=1e-5, atol=1e-5), (out2, ref2)

    # Larger shape exercising the tiled spatial grid, the 2-way split axis and
    # non-uniform class weights.
    k3, k4 = jax.random.split(k1)
    N2, C2, H2, W2 = 1, 3, 256, 512
    logits2 = jax.random.normal(k3, (N2, C2, H2, W2), dtype=jnp.float32)
    probs2 = jax.nn.softmax(logits2, axis=1)
    target2 = jax.random.randint(k4, (N2, 1, H2, W2), 0, C2).astype(jnp.float32)
    w2 = [0.5, 1.0, 2.0]
    out3 = jax.block_until_ready(
        dice_loss(probs2, target2, n_classes=C2, weight=w2, softmax=False))
    ref3 = _reference_dice_loss(probs2, target2, n_classes=C2, weight=w2, softmax=False)
    assert jnp.allclose(out3, ref3, rtol=1e-4, atol=1e-5), (out3, ref3)

    # Fused-softmax path on the large shape.
    out4 = jax.block_until_ready(
        dice_loss(logits2, target2, n_classes=C2, weight=w2, softmax=True))
    ref4 = _reference_dice_loss(logits2, target2, n_classes=C2, weight=w2, softmax=True)
    assert jnp.allclose(out4, ref4, rtol=1e-4, atol=1e-5), (out4, ref4)

    # Ragged H*W (not a multiple of 128): padded copy + in-kernel validity mask.
    k5, k6 = jax.random.split(k3)
    N3, C3, H3, W3 = 2, 3, 12, 12
    logits3 = jax.random.normal(k5, (N3, C3, H3, W3), dtype=jnp.float32)
    target3 = jax.random.randint(k6, (N3, 1, H3, W3), 0, C3).astype(jnp.float32)
    out5 = jax.block_until_ready(dice_loss(logits3, target3, n_classes=C3, softmax=True))
    ref5 = _reference_dice_loss(logits3, target3, n_classes=C3, softmax=True)
    assert jnp.allclose(out5, ref5, rtol=1e-5, atol=1e-5), (out5, ref5)

    print("KERNEL_OK")
</pallas_src>

<mosaic_0001>
module attributes {stable_mosaic.version = 11 : i64} {
  func.func @kernel(%arg0: i32, %arg1: i32, %arg2: i32, %arg3: memref<1x4x2x128xf32, #tpu.memory_space<vmem>>, %arg4: memref<1x1x2x128xf32, #tpu.memory_space<vmem>>, %arg5: memref<1x3x4x8x128xf32, #tpu.memory_space<vmem>>) attributes {dimension_semantics = [#tpu.dimension_semantics<parallel>, #tpu.dimension_semantics<arbitrary>, #tpu.dimension_semantics<arbitrary>], iteration_bounds = array<i64: 1, 2, 1>, scalar_prefetch = 0 : i64, scratch_operands = 0 : i64, tpu.core_type = #tpu.core_type<tc>, window_params = [{transform_indices = @transform_0, window_bounds = array<i64: 1, 4, 2, 128>}, {transform_indices = @transform_1, window_bounds = array<i64: 1, 1, 2, 128>}, {transform_indices = @transform_2, window_bounds = array<i64: 1, 3, 4, 8, 128>}]} {
    %c0_i32 = arith.constant 0 : i32
    %0 = arith.cmpi eq, %arg1, %c0_i32 : i32
    %c0_i32_0 = arith.constant 0 : i32
    %1 = arith.cmpi eq, %arg2, %c0_i32_0 : i32
    %2 = arith.andi %0, %1 : i1
    %3 = arith.extui %2 : i1 to i32
    %c0_i32_1 = arith.constant 0 : i32
    %4 = arith.cmpi ne, %3, %c0_i32_1 : i32
    scf.if %4 {
      %cst_143 = arith.constant 0.000000e+00 : f32
      %146 = vector.broadcast %cst_143 : f32 to vector<3x4x8x128xf32>
      %c0_144 = arith.constant 0 : index
      %c0_145 = arith.constant 0 : index
      %c0_146 = arith.constant 0 : index
      %c0_147 = arith.constant 0 : index
      %c0_148 = arith.constant 0 : index
      %147 = vector.load %arg5[%c0_144, %c0_145, %c0_146, %c0_147, %c0_148] : memref<1x3x4x8x128xf32, #tpu.memory_space<vmem>>, vector<1x3x4x8x128xf32>
      %148 = vector.shape_cast %147 : vector<1x3x4x8x128xf32> to vector<3x4x8x128xf32>
      %149 = vector.shape_cast %146 : vector<3x4x8x128xf32> to vector<1x3x4x8x128xf32>
      tpu.vector_store %arg5[%c0_144, %c0_145, %c0_146, %c0_147, %c0_148], %149 {strides = array<i32>} : memref<1x3x4x8x128xf32, #tpu.memory_space<vmem>>, vector<1x3x4x8x128xf32>,
    } else {
    }
    %c0 = arith.constant 0 : index
    %c0_2 = arith.constant 0 : index
    %c0_3 = arith.constant 0 : index
    %c0_4 = arith.constant 0 : index
    %5 = vector.load %arg4[%c0, %c0_2, %c0_3, %c0_4] : memref<1x1x2x128xf32, #tpu.memory_space<vmem>>, vector<1x1x2x128xf32>
    %6 = vector.shape_cast %5 : vector<1x1x2x128xf32> to vector<2x128xf32>
    %c0_5 = arith.constant 0 : index
    %c0_6 = arith.constant 0 : index
    %c0_7 = arith.constant 0 : index
    %c0_8 = arith.constant 0 : index
    %7 = vector.load %arg3[%c0_5, %c0_6, %c0_7, %c0_8] : memref<1x4x2x128xf32, #tpu.memory_space<vmem>>, vector<1x4x2x128xf32>
    %8 = vector.shape_cast %7 : vector<1x4x2x128xf32> to vector<4x2x128xf32>
    %cst = arith.constant dense<0xFF800000> : vector<2x128xf32>
    %9 = vector.multi_reduction <maximumf>, %8, %cst [0] : vector<4x2x128xf32> to vector<2x128xf32>
    %10 = vector.shape_cast %9 : vector<2x128xf32> to vector<1x2x128xf32>
    %11 = vector.broadcast %10 : vector<1x2x128xf32> to vector<4x2x128xf32>
    %12 = arith.subf %8, %11 : vector<4x2x128xf32>
    %13 = math.exp %12 : vector<4x2x128xf32>
    %cst_9 = arith.constant dense<0.000000e+00> : vector<2x128xf32>
    %14 = vector.multi_reduction <add>, %13, %cst_9 [0] : vector<4x2x128xf32> to vector<2x128xf32>
    %15 = vector.shape_cast %14 : vector<2x128xf32> to vector<1x2x128xf32>
    %16 = vector.broadcast %15 : vector<1x2x128xf32> to vector<4x2x128xf32>
    %17 = arith.divf %13, %16 : vector<4x2x128xf32>
    %18 = vector.extract_strided_slice %17 {offsets = [0, 0, 0], sizes = [1, 2, 128], strides = [1, 1, 1]} : vector<4x2x128xf32> to vector<1x2x128xf32>
    %19 = vector.shape_cast %18 : vector<1x2x128xf32> to vector<2x128xf32>
    %cst_10 = arith.constant 0.000000e+00 : f32
    %20 = vector.broadcast %cst_10 : f32 to vector<2x128xf32>
    %21 = arith.cmpf oeq, %6, %20 : vector<2x128xf32>
    %22 = arith.extui %21 : vector<2x128xi1> to vector<2x128xi32>
    %23 = arith.sitofp %22 : vector<2x128xi32> to vector<2x128xf32>
    %c0_11 = arith.constant 0 : index
    %c0_12 = arith.constant 0 : index
    %c0_13 = arith.constant 0 : index
    %c0_14 = arith.constant 0 : index
    %c0_15 = arith.constant 0 : index
    %24 = vector.load %arg5[%c0_11, %c0_12, %c0_13, %c0_14, %c0_15] : memref<1x3x4x8x128xf32, #tpu.memory_space<vmem>>, vector<1x1x1x1x128xf32>
    %25 = vector.shape_cast %24 : vector<1x1x1x1x128xf32> to vector<1x128xf32>
    %26 = arith.mulf %23, %19 : vector<2x128xf32>
    %cst_16 = arith.constant dense<0.000000e+00> : vector<128xf32>
    %27 = vector.multi_reduction <add>, %26, %cst_16 [0] : vector<2x128xf32> to vector<128xf32>
    %28 = vector.shape_cast %27 : vector<128xf32> to vector<1x128xf32>
    %29 = arith.addf %25, %28 : vector<1x128xf32>
    %c0_17 = arith.constant 0 : index
    %c0_18 = arith.constant 0 : index
    %c0_19 = arith.constant 0 : index
    %c0_20 = arith.constant 0 : index
    %c0_21 = arith.constant 0 : index
    %30 = vector.load %arg5[%c0_17, %c0_18, %c0_19, %c0_20, %c0_21] : memref<1x3x4x8x128xf32, #tpu.memory_space<vmem>>, vector<1x1x1x1x128xf32>
    %31 = vector.shape_cast %30 : vector<1x1x1x1x128xf32> to vector<1x128xf32>
    %32 = vector.shape_cast %29 : vector<1x128xf32> to vector<1x1x1x1x128xf32>
    tpu.vector_store %arg5[%c0_17, %c0_18, %c0_19, %c0_20, %c0_21], %32 {strides = array<i32>} : memref<1x3x4x8x128xf32, #tpu.memory_space<vmem>>, vector<1x1x1x1x128xf32>,
    %c0_22 = arith.constant 0 : index
    %c1 = arith.constant 1 : index
    %c0_23 = arith.constant 0 : index
    %c0_24 = arith.constant 0 : index
    %c0_25 = arith.constant 0 : index
    %33 = vector.load %arg5[%c0_22, %c1, %c0_23, %c0_24, %c0_25] : memref<1x3x4x8x128xf32, #tpu.memory_space<vmem>>, vector<1x1x1x1x128xf32>
    %34 = vector.shape_cast %33 : vector<1x1x1x1x128xf32> to vector<1x128xf32>
    %cst_26 = arith.constant dense<0.000000e+00> : vector<128xf32>
    %35 = vector.multi_reduction <add>, %23, %cst_26 [0] : vector<2x128xf32> to vector<128xf32>
    %36 = vector.shape_cast %35 : vector<128xf32> to vector<1x128xf32>
    %37 = arith.addf %34, %36 : vector<1x128xf32>
    %c0_27 = arith.constant 0 : index
    %c1_28 = arith.constant 1 : index
    %c0_29 = arith.constant 0 : index
    %c0_30 = arith.constant 0 : index
    %c0_31 = arith.constant 0 : index
    %38 = vector.load %arg5[%c0_27, %c1_28, %c0_29, %c0_30, %c0_31] : memref<1x3x4x8x128xf32, #tpu.memory_space<vmem>>, vector<1x1x1x1x128xf32>
    %39 = vector.shape_cast %38 : vector<1x1x1x1x128xf32> to vector<1x128xf32>
    %40 = vector.shape_cast %37 : vector<1x128xf32> to vector<1x1x1x1x128xf32>
    tpu.vector_store %arg5[%c0_27, %c1_28, %c0_29, %c0_30, %c0_31], %40 {strides = array<i32>} : memref<1x3x4x8x128xf32, #tpu.memory_space<vmem>>, vector<1x1x1x1x128xf32>,
    %c0_32 = arith.constant 0 : index
    %c2 = arith.constant 2 : index
    %c0_33 = arith.constant 0 : index
    %c0_34 = arith.constant 0 : index
    %c0_35 = arith.constant 0 : index
    %41 = vector.load %arg5[%c0_32, %c2, %c0_33, %c0_34, %c0_35] : memref<1x3x4x8x128xf32, #tpu.memory_space<vmem>>, vector<1x1x1x1x128xf32>
    %42 = vector.shape_cast %41 : vector<1x1x1x1x128xf32> to vector<1x128xf32>
    %43 = arith.mulf %19, %19 : vector<2x128xf32>
    %cst_36 = arith.constant dense<0.000000e+00> : vector<128xf32>
    %44 = vector.multi_reduction <add>, %43, %cst_36 [0] : vector<2x128xf32> to vector<128xf32>
    %45 = vector.shape_cast %44 : vector<128xf32> to vector<1x128xf32>
    %46 = arith.addf %42, %45 : vector<1x128xf32>
    %c0_37 = arith.constant 0 : index
    %c2_38 = arith.constant 2 : index
    %c0_39 = arith.constant 0 : index
    %c0_40 = arith.constant 0 : index
    %c0_41 = arith.constant 0 : index
    %47 = vector.load %arg5[%c0_37, %c2_38, %c0_39, %c0_40, %c0_41] : memref<1x3x4x8x128xf32, #tpu.memory_space<vmem>>, vector<1x1x1x1x128xf32>
    %48 = vector.shape_cast %47 : vector<1x1x1x1x128xf32> to vector<1x128xf32>
    %49 = vector.shape_cast %46 : vector<1x128xf32> to vector<1x1x1x1x128xf32>
    tpu.vector_store %arg5[%c0_37, %c2_38, %c0_39, %c0_40, %c0_41], %49 {strides = array<i32>} : memref<1x3x4x8x128xf32, #tpu.memory_space<vmem>>, vector<1x1x1x1x128xf32>,
    %50 = vector.extract_strided_slice %17 {offsets = [1, 0, 0], sizes = [1, 2, 128], strides = [1, 1, 1]} : vector<4x2x128xf32> to vector<1x2x128xf32>
    %51 = vector.shape_cast %50 : vector<1x2x128xf32> to vector<2x128xf32>
    %cst_42 = arith.constant 1.000000e+00 : f32
    %52 = vector.broadcast %cst_42 : f32 to vector<2x128xf32>
    %53 = arith.cmpf oeq, %6, %52 : vector<2x128xf32>
    %54 = arith.extui %53 : vector<2x128xi1> to vector<2x128xi32>
    %55 = arith.sitofp %54 : vector<2x128xi32> to vector<2x128xf32>
    %c0_43 = arith.constant 0 : index
    %c0_44 = arith.constant 0 : index
    %c1_45 = arith.constant 1 : index
    %c0_46 = arith.constant 0 : index
    %c0_47 = arith.constant 0 : index
    %56 = vector.load %arg5[%c0_43, %c0_44, %c1_45, %c0_46, %c0_47] : memref<1x3x4x8x128xf32, #tpu.memory_space<vmem>>, vector<1x1x1x1x128xf32>
    %57 = vector.shape_cast %56 : vector<1x1x1x1x128xf32> to vector<1x128xf32>
    %58 = arith.mulf %55, %51 : vector<2x128xf32>
    %cst_48 = arith.constant dense<0.000000e+00> : vector<128xf32>
    %59 = vector.multi_reduction <add>, %58, %cst_48 [0] : vector<2x128xf32> to vector<128xf32>
    %60 = vector.shape_cast %59 : vector<128xf32> to vector<1x128xf32>
    %61 = arith.addf %57, %60 : vector<1x128xf32>
    %c0_49 = arith.constant 0 : index
    %c0_50 = arith.constant 0 : index
    %c1_51 = arith.constant 1 : index
    %c0_52 = arith.constant 0 : index
    %c0_53 = arith.constant 0 : index
    %62 = vector.load %arg5[%c0_49, %c0_50, %c1_51, %c0_52, %c0_53] : memref<1x3x4x8x128xf32, #tpu.memory_space<vmem>>, vector<1x1x1x1x128xf32>
    %63 = vector.shape_cast %62 : vector<1x1x1x1x128xf32> to vector<1x128xf32>
    %64 = vector.shape_cast %61 : vector<1x128xf32> to vector<1x1x1x1x128xf32>
    tpu.vector_store %arg5[%c0_49, %c0_50, %c1_51, %c0_52, %c0_53], %64 {strides = array<i32>} : memref<1x3x4x8x128xf32, #tpu.memory_space<vmem>>, vector<1x1x1x1x128xf32>,
    %c0_54 = arith.constant 0 : index
    %c1_55 = arith.constant 1 : index
    %c1_56 = arith.constant 1 : index
    %c0_57 = arith.constant 0 : index
    %c0_58 = arith.constant 0 : index
    %65 = vector.load %arg5[%c0_54, %c1_55, %c1_56, %c0_57, %c0_58] : memref<1x3x4x8x128xf32, #tpu.memory_space<vmem>>, vector<1x1x1x1x128xf32>
    %66 = vector.shape_cast %65 : vector<1x1x1x1x128xf32> to vector<1x128xf32>
    %cst_59 = arith.constant dense<0.000000e+00> : vector<128xf32>
    %67 = vector.multi_reduction <add>, %55, %cst_59 [0] : vector<2x128xf32> to vector<128xf32>
    %68 = vector.shape_cast %67 : vector<128xf32> to vector<1x128xf32>
    %69 = arith.addf %66, %68 : vector<1x128xf32>
    %c0_60 = arith.constant 0 : index
    %c1_61 = arith.constant 1 : index
    %c1_62 = arith.constant 1 : index
    %c0_63 = arith.constant 0 : index
    %c0_64 = arith.constant 0 : index
    %70 = vector.load %arg5[%c0_60, %c1_61, %c1_62, %c0_63, %c0_64] : memref<1x3x4x8x128xf32, #tpu.memory_space<vmem>>, vector<1x1x1x1x128xf32>
    %71 = vector.shape_cast %70 : vector<1x1x1x1x128xf32> to vector<1x128xf32>
    %72 = vector.shape_cast %69 : vector<1x128xf32> to vector<1x1x1x1x128xf32>
    tpu.vector_store %arg5[%c0_60, %c1_61, %c1_62, %c0_63, %c0_64], %72 {strides = array<i32>} : memref<1x3x4x8x128xf32, #tpu.memory_space<vmem>>, vector<1x1x1x1x128xf32>,
    %c0_65 = arith.constant 0 : index
    %c2_66 = arith.constant 2 : index
    %c1_67 = arith.constant 1 : index
    %c0_68 = arith.constant 0 : index
    %c0_69 = arith.constant 0 : index
    %73 = vector.load %arg5[%c0_65, %c2_66, %c1_67, %c0_68, %c0_69] : memref<1x3x4x8x128xf32, #tpu.memory_space<vmem>>, vector<1x1x1x1x128xf32>
    %74 = vector.shape_cast %73 : vector<1x1x1x1x128xf32> to vector<1x128xf32>
    %75 = arith.mulf %51, %51 : vector<2x128xf32>
    %cst_70 = arith.constant dense<0.000000e+00> : vector<128xf32>
    %76 = vector.multi_reduction <add>, %75, %cst_70 [0] : vector<2x128xf32> to vector<128xf32>
    %77 = vector.shape_cast %76 : vector<128xf32> to vector<1x128xf32>
    %78 = arith.addf %74, %77 : vector<1x128xf32>
    %c0_71 = arith.constant 0 : index
    %c2_72 = arith.constant 2 : index
    %c1_73 = arith.constant 1 : index
    %c0_74 = arith.constant 0 : index
    %c0_75 = arith.constant 0 : index
    %79 = vector.load %arg5[%c0_71, %c2_72, %c1_73, %c0_74, %c0_75] : memref<1x3x4x8x128xf32, #tpu.memory_space<vmem>>, vector<1x1x1x1x128xf32>
    %80 = vector.shape_cast %79 : vector<1x1x1x1x128xf32> to vector<1x128xf32>
    %81 = vector.shape_cast %78 : vector<1x128xf32> to vector<1x1x1x1x128xf32>
    tpu.vector_store %arg5[%c0_71, %c2_72, %c1_73, %c0_74, %c0_75], %81 {strides = array<i32>} : memref<1x3x4x8x128xf32, #tpu.memory_space<vmem>>, vector<1x1x1x1x128xf32>,
    %82 = vector.extract_strided_slice %17 {offsets = [2, 0, 0], sizes = [1, 2, 128], strides = [1, 1, 1]} : vector<4x2x128xf32> to vector<1x2x128xf32>
    %83 = vector.shape_cast %82 : vector<1x2x128xf32> to vector<2x128xf32>
    %cst_76 = arith.constant 2.000000e+00 : f32
    %84 = vector.broadcast %cst_76 : f32 to vector<2x128xf32>
    %85 = arith.cmpf oeq, %6, %84 : vector<2x128xf32>
    %86 = arith.extui %85 : vector<2x128xi1> to vector<2x128xi32>
    %87 = arith.sitofp %86 : vector<2x128xi32> to vector<2x128xf32>
    %c0_77 = arith.constant 0 : index
    %c0_78 = arith.constant 0 : index
    %c2_79 = arith.constant 2 : index
    %c0_80 = arith.constant 0 : index
    %c0_81 = arith.constant 0 : index
    %88 = vector.load %arg5[%c0_77, %c0_78, %c2_79, %c0_80, %c0_81] : memref<1x3x4x8x128xf32, #tpu.memory_space<vmem>>, vector<1x1x1x1x128xf32>
    %89 = vector.shape_cast %88 : vector<1x1x1x1x128xf32> to vector<1x128xf32>
    %90 = arith.mulf %87, %83 : vector<2x128xf32>
    %cst_82 = arith.constant dense<0.000000e+00> : vector<128xf32>
    %91 = vector.multi_reduction <add>, %90, %cst_82 [0] : vector<2x128xf32> to vector<128xf32>
    %92 = vector.shape_cast %91 : vector<128xf32> to vector<1x128xf32>
    %93 = arith.addf %89, %92 : vector<1x128xf32>
    %c0_83 = arith.constant 0 : index
    %c0_84 = arith.constant 0 : index
    %c2_85 = arith.constant 2 : index
    %c0_86 = arith.constant 0 : index
    %c0_87 = arith.constant 0 : index
    %94 = vector.load %arg5[%c0_83, %c0_84, %c2_85, %c0_86, %c0_87] : memref<1x3x4x8x128xf32, #tpu.memory_space<vmem>>, vector<1x1x1x1x128xf32>
    %95 = vector.shape_cast %94 : vector<1x1x1x1x128xf32> to vector<1x128xf32>
    %96 = vector.shape_cast %93 : vector<1x128xf32> to vector<1x1x1x1x128xf32>
    tpu.vector_store %arg5[%c0_83, %c0_84, %c2_85, %c0_86, %c0_87], %96 {strides = array<i32>} : memref<1x3x4x8x128xf32, #tpu.memory_space<vmem>>, vector<1x1x1x1x128xf32>,
    %c0_88 = arith.constant 0 : index
    %c1_89 = arith.constant 1 : index
    %c2_90 = arith.constant 2 : index
    %c0_91 = arith.constant 0 : index
    %c0_92 = arith.constant 0 : index
    %97 = vector.load %arg5[%c0_88, %c1_89, %c2_90, %c0_91, %c0_92] : memref<1x3x4x8x128xf32, #tpu.memory_space<vmem>>, vector<1x1x1x1x128xf32>
    %98 = vector.shape_cast %97 : vector<1x1x1x1x128xf32> to vector<1x128xf32>
    %cst_93 = arith.constant dense<0.000000e+00> : vector<128xf32>
    %99 = vector.multi_reduction <add>, %87, %cst_93 [0] : vector<2x128xf32> to vector<128xf32>
    %100 = vector.shape_cast %99 : vector<128xf32> to vector<1x128xf32>
    %101 = arith.addf %98, %100 : vector<1x128xf32>
    %c0_94 = arith.constant 0 : index
    %c1_95 = arith.constant 1 : index
    %c2_96 = arith.constant 2 : index
    %c0_97 = arith.constant 0 : index
    %c0_98 = arith.constant 0 : index
    %102 = vector.load %arg5[%c0_94, %c1_95, %c2_96, %c0_97, %c0_98] : memref<1x3x4x8x128xf32, #tpu.memory_space<vmem>>, vector<1x1x1x1x128xf32>
    %103 = vector.shape_cast %102 : vector<1x1x1x1x128xf32> to vector<1x128xf32>
    %104 = vector.shape_cast %101 : vector<1x128xf32> to vector<1x1x1x1x128xf32>
    tpu.vector_store %arg5[%c0_94, %c1_95, %c2_96, %c0_97, %c0_98], %104 {strides = array<i32>} : memref<1x3x4x8x128xf32, #tpu.memory_space<vmem>>, vector<1x1x1x1x128xf32>,
    %c0_99 = arith.constant 0 : index
    %c2_100 = arith.constant 2 : index
    %c2_101 = arith.constant 2 : index
    %c0_102 = arith.constant 0 : index
    %c0_103 = arith.constant 0 : index
    %105 = vector.load %arg5[%c0_99, %c2_100, %c2_101, %c0_102, %c0_103] : memref<1x3x4x8x128xf32, #tpu.memory_space<vmem>>, vector<1x1x1x1x128xf32>
    %106 = vector.shape_cast %105 : vector<1x1x1x1x128xf32> to vector<1x128xf32>
    %107 = arith.mulf %83, %83 : vector<2x128xf32>
    %cst_104 = arith.constant dense<0.000000e+00> : vector<128xf32>
    %108 = vector.multi_reduction <add>, %107, %cst_104 [0] : vector<2x128xf32> to vector<128xf32>
    %109 = vector.shape_cast %108 : vector<128xf32> to vector<1x128xf32>
    %110 = arith.addf %106, %109 : vector<1x128xf32>
    %c0_105 = arith.constant 0 : index
    %c2_106 = arith.constant 2 : index
    %c2_107 = arith.constant 2 : index
    %c0_108 = arith.constant 0 : index
    %c0_109 = arith.constant 0 : index
    %111 = vector.load %arg5[%c0_105, %c2_106, %c2_107, %c0_108, %c0_109] : memref<1x3x4x8x128xf32, #tpu.memory_space<vmem>>, vector<1x1x1x1x128xf32>
    %112 = vector.shape_cast %111 : vector<1x1x1x1x128xf32> to vector<1x128xf32>
    %113 = vector.shape_cast %110 : vector<1x128xf32> to vector<1x1x1x1x128xf32>
    tpu.vector_store %arg5[%c0_105, %c2_106, %c2_107, %c0_108, %c0_109], %113 {strides = array<i32>} : memref<1x3x4x8x128xf32, #tpu.memory_space<vmem>>, vector<1x1x1x1x128xf32>,
    %114 = vector.extract_strided_slice %17 {offsets = [3, 0, 0], sizes = [1, 2, 128], strides = [1, 1, 1]} : vector<4x2x128xf32> to vector<1x2x128xf32>
    %115 = vector.shape_cast %114 : vector<1x2x128xf32> to vector<2x128xf32>
    %cst_110 = arith.constant 3.000000e+00 : f32
    %116 = vector.broadcast %cst_110 : f32 to vector<2x128xf32>
    %117 = arith.cmpf oeq, %6, %116 : vector<2x128xf32>
    %118 = arith.extui %117 : vector<2x128xi1> to vector<2x128xi32>
    %119 = arith.sitofp %118 : vector<2x128xi32> to vector<2x128xf32>
    %c0_111 = arith.constant 0 : index
    %c0_112 = arith.constant 0 : index
    %c3 = arith.constant 3 : index
    %c0_113 = arith.constant 0 : index
    %c0_114 = arith.constant 0 : index
    %120 = vector.load %arg5[%c0_111, %c0_112, %c3, %c0_113, %c0_114] : memref<1x3x4x8x128xf32, #tpu.memory_space<vmem>>, vector<1x1x1x1x128xf32>
    %121 = vector.shape_cast %120 : vector<1x1x1x1x128xf32> to vector<1x128xf32>
    %122 = arith.mulf %119, %115 : vector<2x128xf32>
    %cst_115 = arith.constant dense<0.000000e+00> : vector<128xf32>
    %123 = vector.multi_reduction <add>, %122, %cst_115 [0] : vector<2x128xf32> to vector<128xf32>
    %124 = vector.shape_cast %123 : vector<128xf32> to vector<1x128xf32>
    %125 = arith.addf %121, %124 : vector<1x128xf32>
    %c0_116 = arith.constant 0 : index
    %c0_117 = arith.constant 0 : index
    %c3_118 = arith.constant 3 : index
    %c0_119 = arith.constant 0 : index
    %c0_120 = arith.constant 0 : index
    %126 = vector.load %arg5[%c0_116, %c0_117, %c3_118, %c0_119, %c0_120] : memref<1x3x4x8x128xf32, #tpu.memory_space<vmem>>, vector<1x1x1x1x128xf32>
    %127 = vector.shape_cast %126 : vector<1x1x1x1x128xf32> to vector<1x128xf32>
    %128 = vector.shape_cast %125 : vector<1x128xf32> to vector<1x1x1x1x128xf32>
    tpu.vector_store %arg5[%c0_116, %c0_117, %c3_118, %c0_119, %c0_120], %128 {strides = array<i32>} : memref<1x3x4x8x128xf32, #tpu.memory_space<vmem>>, vector<1x1x1x1x128xf32>,
    %c0_121 = arith.constant 0 : index
    %c1_122 = arith.constant 1 : index
    %c3_123 = arith.constant 3 : index
    %c0_124 = arith.constant 0 : index
    %c0_125 = arith.constant 0 : index
    %129 = vector.load %arg5[%c0_121, %c1_122, %c3_123, %c0_124, %c0_125] : memref<1x3x4x8x128xf32, #tpu.memory_space<vmem>>, vector<1x1x1x1x128xf32>
    %130 = vector.shape_cast %129 : vector<1x1x1x1x128xf32> to vector<1x128xf32>
    %cst_126 = arith.constant dense<0.000000e+00> : vector<128xf32>
    %131 = vector.multi_reduction <add>, %119, %cst_126 [0] : vector<2x128xf32> to vector<128xf32>
    %132 = vector.shape_cast %131 : vector<128xf32> to vector<1x128xf32>
    %133 = arith.addf %130, %132 : vector<1x128xf32>
    %c0_127 = arith.constant 0 : index
    %c1_128 = arith.constant 1 : index
    %c3_129 = arith.constant 3 : index
    %c0_130 = arith.constant 0 : index
    %c0_131 = arith.constant 0 : index
    %134 = vector.load %arg5[%c0_127, %c1_128, %c3_129, %c0_130, %c0_131] : memref<1x3x4x8x128xf32, #tpu.memory_space<vmem>>, vector<1x1x1x1x128xf32>
    %135 = vector.shape_cast %134 : vector<1x1x1x1x128xf32> to vector<1x128xf32>
    %136 = vector.shape_cast %133 : vector<1x128xf32> to vector<1x1x1x1x128xf32>
    tpu.vector_store %arg5[%c0_127, %c1_128, %c3_129, %c0_130, %c0_131], %136 {strides = array<i32>} : memref<1x3x4x8x128xf32, #tpu.memory_space<vmem>>, vector<1x1x1x1x128xf32>,
    %c0_132 = arith.constant 0 : index
    %c2_133 = arith.constant 2 : index
    %c3_134 = arith.constant 3 : index
    %c0_135 = arith.constant 0 : index
    %c0_136 = arith.constant 0 : index
    %137 = vector.load %arg5[%c0_132, %c2_133, %c3_134, %c0_135, %c0_136] : memref<1x3x4x8x128xf32, #tpu.memory_space<vmem>>, vector<1x1x1x1x128xf32>
    %138 = vector.shape_cast %137 : vector<1x1x1x1x128xf32> to vector<1x128xf32>
    %139 = arith.mulf %115, %115 : vector<2x128xf32>
    %cst_137 = arith.constant dense<0.000000e+00> : vector<128xf32>
    %140 = vector.multi_reduction <add>, %139, %cst_137 [0] : vector<2x128xf32> to vector<128xf32>
    %141 = vector.shape_cast %140 : vector<128xf32> to vector<1x128xf32>
    %142 = arith.addf %138, %141 : vector<1x128xf32>
    %c0_138 = arith.constant 0 : index
    %c2_139 = arith.constant 2 : index
    %c3_140 = arith.constant 3 : index
    %c0_141 = arith.constant 0 : index
    %c0_142 = arith.constant 0 : index
    %143 = vector.load %arg5[%c0_138, %c2_139, %c3_140, %c0_141, %c0_142] : memref<1x3x4x8x128xf32, #tpu.memory_space<vmem>>, vector<1x1x1x1x128xf32>
    %144 = vector.shape_cast %143 : vector<1x1x1x1x128xf32> to vector<1x128xf32>
    %145 = vector.shape_cast %142 : vector<1x128xf32> to vector<1x1x1x1x128xf32>
    tpu.vector_store %arg5[%c0_138, %c2_139, %c3_140, %c0_141, %c0_142], %145 {strides = array<i32>} : memref<1x3x4x8x128xf32, #tpu.memory_space<vmem>>, vector<1x1x1x1x128xf32>,
    return
  }
  func.func @transform_0(%arg0: i32, %arg1: i32, %arg2: i32) -> (i32, i32, i32, i32) {
    %c1_i32 = arith.constant 1 : i32
    %0 = arith.muli %arg0, %c1_i32 : i32
    %1 = arith.addi %0, %arg2 : i32
    %c0_i32 = arith.constant 0 : i32
    %2 = arith.minsi %1, %c0_i32 : i32
    %c0_i32_0 = arith.constant 0 : i32
    %c0_i32_1 = arith.constant 0 : i32
    %c0_i32_2 = arith.constant 0 : i32
    return %arg1, %c0_i32_0, %2, %c0_i32_1 : i32, i32, i32, i32
  }
  func.func @transform_1(%arg0: i32, %arg1: i32, %arg2: i32) -> (i32, i32, i32, i32) {
    %c1_i32 = arith.constant 1 : i32
    %0 = arith.muli %arg0, %c1_i32 : i32
    %1 = arith.addi %0, %arg2 : i32
    %c0_i32 = arith.constant 0 : i32
    %2 = arith.minsi %1, %c0_i32 : i32
    %c0_i32_0 = arith.constant 0 : i32
    %c0_i32_1 = arith.constant 0 : i32
    %c0_i32_2 = arith.constant 0 : i32
    return %arg1, %c0_i32_0, %2, %c0_i32_1 : i32, i32, i32, i32
  }
  func.func @transform_2(%arg0: i32, %arg1: i32, %arg2: i32) -> (i32, i32, i32, i32, i32) {
    %c0_i32 = arith.constant 0 : i32
    %c0_i32_0 = arith.constant 0 : i32
    %c0_i32_1 = arith.constant 0 : i32
    %c0_i32_2 = arith.constant 0 : i32
    %c0_i32_3 = arith.constant 0 : i32
    return %arg0, %c0_i32, %c0_i32_0, %c0_i32_1, %c0_i32_2 : i32, i32, i32, i32, i32
  }
}

</mosaic_0001>

<bundles_post_ra>
// kernel: tpu_custom_call.1
= control target key start
LH: loop header
LB: loop body
LE: loop exit
PB: predicated region body
PF: predicated region fallthrough
CT: control target
= control target key end

     0   :  { %7 = vsyncpa [#allocation3], 0  ;;  %s1050_s0 = inlined_call_operand.hbm [shape: f32[2,4,2,128], index: 0, kind: input, shape index: {}]   ;;  %s1051_s1 = inlined_call_operand.hbm [shape: f32[2,1,2,128], index: 1, kind: input, shape index: {}]   ;;  %s1052_s2 = inlined_call_operand.hbm [shape: f32[1,3,4,8,128], index: 2, kind: output, shape index: {}]  }
   0x1   :  { %9 = vsyncpa [#allocation3 + $0x1], 0 }
   0x2   :  { %10 = vsyncpa [#allocation6], 0 }
   0x3   :  { %12 = vsyncpa [#allocation6 + $0x1], 0 }
   0x4   :  { %13 = vsyncpa [#allocation4], 0  ;;  %s824_s9 = smov 0   ;;  %s826_s10 = smov 0  }
   0x5   :  { %s828_s11 = smov 0   ;;  %s830_s12 = smov 0  }
   0x6   :  { %s832_s13 = smov 0   ;;  %s834_s14 = smov 0  }
   0x7 LB: > { %s549_s15 = sadd.s32 4294967295, %s798_s14   ;;  %s34_s16 = sadd.s32 1, %s794_s13  ;;  %s798_s14 = sphi %s834_s14, %s19_s14   ;;  %s794_s13 = sphi %s832_s13, %s1065_s13   ;;  %s790_s12 = sphi %s830_s12, %s1064_s12   ;;  %s786_s11 = sphi %s828_s11, %s1063_s11   ;;  %s782_s10 = sphi %s826_s10, %s1062_s10   ;;  %s778_s9 = sphi %s824_s9, %s1061_s9  }
   0x8   : > { %p36_p0 = scmp.ge.s32.totalorder %s34_s16, 2  ;;  %s53_s17 = sadd.s32 1, %s786_s11 }
   0x9   : > { %p60_p1 = scmp.ne.s32.totalorder %s786_s11, %s782_s10  ;;  %p61_p2 = scmp.eq.s32.totalorder %s798_s14, 0 }
   0xa   : > { %s1067_s16 = smov (%p36_p0, %s34_s16), 0  ;;  %p66_p4 = scmp.ne.s32.totalorder %s782_s10, %s778_s9 }
   0xb   : > { %p860_p3 = por %p61_p2, %p60_p1  ;;  %s48_s19 = ssub.s32 %s794_s13, %s1067_s16 }
   0xc   : > { %p67_p5 = scmp.eq.s32.totalorder %s549_s15, 0  ;;  %p51_p6 = scmp.eq.s32.totalorder %s48_s19, 0 }
   0xd   : > { %p586_p8 = scmp.lt.s32.totalorder %s798_s14, 2  ;;  %s878_s22 = sand.u32 1, %s786_s11  }
   0xe   : > { %p869_p7 = por %p67_p5, %p66_p4  ;;  %s569_s23 = sshll.u32 %s794_s13, 7 }
   0xf   : > { %s875_s21 = scalar_select %p51_p6, %s786_s11, %s53_s17  }
  0x10   : > { %s1055_s20 = scalar_select %p869_p7, 1, 0 }
  0x11   : > { %s552_s24 = sshll.u32 %s878_s22, 3  ;;  %s885_s27 = scalar_lea.hbm %s1050_s0, %s569_s23 }
  0x12   : > { %s154_s28 = scalar_lea.vmem [#allocation2], %s552_s24  ;;  %p889_p9 = pnand %p586_p8, %p860_p3 }
  0x13   : > { %s165_s29 = sshll.u32 %s154_s28, 4  ;;  %s151_s3 = scalar_lea.sflag [#allocation3], %s878_s22  ;;  %s893_s29 = int_to_ptr.vmem [resolvable:$true] %s165_s29 }
  0x14   : > { %s654_s4 = scalar_lea.hbm %s885_s27, 128  ;;  %p656_p11 = pneg %p889_p9 }
  0x15   : > { %p655_p10 = scmp.ne.s32.totalorder %s885_s27, %s654_s4  ;;  %s659_s7 = scalar_lea.hbm %s1050_s0, 256 }
  0x16   : > { %p660_p0 = scmp.lt.u32.totalorder %s885_s27, %s1050_s0  ;;  %p661_p1 = scmp.lt.u32.totalorder %s659_s7, %s654_s4 }
  0x17   : > { %p657_p12 = pnand %p656_p11, %p655_p10  ;;  %p663_p3 = scmp.lt.u32.totalorder %s654_s4, %s885_s27 }
  0x18   : > { %p662_p2 = por %p661_p1, %p660_p0 }
  0x19   : > { %p658_p13 = pneg %p657_p12 }
  0x1a   : > { %p664_p4 = por %p663_p3, %p662_p2 }
  0x1c   : > { %p665_p5 = pnand %p664_p4, %p658_p13 }
  0x1e   : > { %668 = shalt.err (!%p665_p5)
}
  0x1f   : > { %s669_s17 = scalar_lea.vmem %s893_s29, 128  ;;  %s800_s18 = smov [#allocation2]  }
  0x20   : > { %p670_p6 = scmp.ne.s32.totalorder %s893_s29, %s669_s17  ;;  %s674_s19 = sshll.u32 %s800_s18, 4  ;;  %s675_s19 = int_to_ptr.vmem [resolvable:$false] %s674_s19 }
  0x21   : > { %s676_s23 = scalar_lea.vmem %s675_s19, 256  ;;  %p677_p12 = scmp.lt.s32.totalorder %s893_s29, %s675_s19 }
  0x22   : > { %p672_p8 = pnand %p670_p6, %p656_p11  ;;  %p678_p0 = scmp.lt.s32.totalorder %s676_s23, %s669_s17 }
  0x24   : > { %p673_p10 = pneg %p672_p8  ;;  %p679_p1 = por %p678_p0, %p677_p12 }
  0x26   : > { %p680_p2 = pnand %p679_p1, %p673_p10 }
  0x28   : > { %683 = shalt.err (!%p680_p2)
}
  0x29   : > { %s801_s24 = smov 32   ;;  %s802_s25 = smov 2  }
  0x2a   : > { %582 = dma.hbm_to_vmem [thread:$0]  (!%p889_p9), %s885_s27, 128, %s893_s29, %s151_s3, %s801_s24, %s801_s24, %s802_s25  }
  0x2b   : > { %p557_p13 = scmp.ge.s32.totalorder %s798_s14, 1  ;;  %p195_p3 = scmp.lt.s32.totalorder %s798_s14, 3 }
  0x2c   : > { %s555_s26 = sshll.u32 %s878_s22, 1  ;;  %s556_s4 = sshll.u32 %s794_s13, 5 }
  0x2d   : > { %p926_p4 = pnand %p557_p13, %p195_p3  ;;  %s179_s5 = scalar_lea.vmem [#allocation5], %s555_s26 }
  0x2e   : > { %s190_s6 = sshll.u32 %s179_s5, 4  ;;  %s934_s9 = scalar_lea.hbm %s1051_s1, %s556_s4  ;;  %s191_s6 = int_to_ptr.vmem [resolvable:$true] %s190_s6 }
  0x2f   : > { %s1057_s28 = scalar_select %p926_p4, 1, 0 }
  0x30   : > { %s176_s27 = scalar_lea.sflag [#allocation6], %s878_s22  ;;  %s684_s29 = scalar_lea.hbm %s934_s9, 32 }
  0x31   : > { %p685_p5 = scmp.ne.s32.totalorder %s934_s9, %s684_s29  ;;  %s689_s18 = scalar_lea.hbm %s1051_s1, 64 }
  0x32   : > { %p690_p10 = scmp.lt.u32.totalorder %s934_s9, %s1051_s1  ;;  %p691_p12 = scmp.lt.u32.totalorder %s689_s18, %s684_s29 }
  0x33   : > { %p687_p6 = pnand %p685_p5, %p656_p11  ;;  %p693_p1 = scmp.lt.u32.totalorder %s684_s29, %s934_s9 }
  0x34   : > { %p692_p0 = por %p691_p12, %p690_p10 }
  0x35   : > { %p688_p8 = pneg %p687_p6 }
  0x36   : > { %p694_p2 = por %p693_p1, %p692_p0 }
  0x38   : > { %p695_p13 = pnand %p694_p2, %p688_p8 }
  0x3a   : > { %698 = shalt.err (!%p695_p13)
}
  0x3b   : > { %s699_s22 = scalar_lea.vmem %s191_s6, 32  ;;  %s803_s24 = smov [#allocation5]  }
  0x3c   : > { %p700_p3 = scmp.ne.s32.totalorder %s191_s6, %s699_s22  ;;  %s704_s25 = sshll.u32 %s803_s24, 4  ;;  %s705_s25 = int_to_ptr.vmem [resolvable:$false] %s704_s25 }
  0x3d   : > { %s706_s26 = scalar_lea.vmem %s705_s25, 64  ;;  %p707_p7 = scmp.lt.s32.totalorder %s191_s6, %s705_s25 }
  0x3e   : > { %p702_p5 = pnand %p700_p3, %p656_p11  ;;  %p708_p4 = scmp.lt.s32.totalorder %s706_s26, %s699_s22 }
  0x40   : > { %p703_p6 = pneg %p702_p5  ;;  %p709_p10 = por %p708_p4, %p707_p7 }
  0x42   : > { %p710_p12 = pnand %p709_p10, %p703_p6 }
  0x44   : > { %713 = shalt.err (!%p710_p12)
}
  0x45   : > { %585 = dma.hbm_to_vmem [thread:$0]  (!%p889_p9), %s934_s9, 32, %s191_s6, %s176_s27  }
  0x46   : > { %p1058_p8 = scmp.ne.s32.totalorder %s1057_s28, 0 }
  0x47   : > { %s201_s4 = sand.u32 (!%p1058_p8), 1, %s782_s10   ;;  %p1059_p11 = scmp.ne.s32.totalorder (!%p1058_p8), %s1055_s20, 0 }
  0x48   : > { %199 = sbr.rel (%p1058_p8) target bundleno = 172 (0xac), region = 28  ;;  %s558_s5 = sshll.u32 (!%p1058_p8), %s201_s4, 3 }
  0x49   : > { %s202_s7 = scalar_lea.sflag (!%p1058_p8), [#allocation3], %s201_s4  ;;  %s205_s8 = scalar_lea.vmem (!%p1058_p8), [#allocation2], %s558_s5 }
  0x4f   : > { %765 = dma.done.wait (%p1059_p11), %s202_s7, 128  }
  0x50   : > { %767 = vsyncadd (%p1059_p11), %s202_s7, 4294967168  ;;  %s559_s29 = sshll.u32 %s201_s4, 1  ;;  %s211_s3 = scalar_lea.sflag [#allocation6], %s201_s4 }
  0x51   : > { %s214_s30 = scalar_lea.vmem [#allocation5], %s559_s29 }
  0x52   : > { %769 = dma.done.wait (%p1059_p11), %s211_s3, 32  }
  0x53   : > { %771 = vsyncadd (%p1059_p11), %s211_s3, 4294967264  ;;  %p241_p7 = scmp.eq.s32.totalorder %s790_s12, 0 }
  0x54   : > { %v804_v0 = vmov (%p241_p7), 0.0  }
  0x55   : > { %246 = sbr.rel (!%p241_p7) target bundleno = 92 (0x5c), region = 40  ;;  %247 = vst [vmem:[#allocation7] sm:$0xff] (%p241_p7), %v804_v0  ;;  %248 = vst [vmem:[#allocation7 + $0x8] sm:$0xff] (%p241_p7), %v804_v0 }
  0x56   : > { %249 = vst [vmem:[#allocation7 + $0x10] sm:$0xff] (%p241_p7), %v804_v0  ;;  %250 = vst [vmem:[#allocation7 + $0x18] sm:$0xff] (%p241_p7), %v804_v0 }
  0x57   : > { %251 = vst [vmem:[#allocation7 + $0x20] sm:$0xff] (%p241_p7), %v804_v0  ;;  %252 = vst [vmem:[#allocation7 + $0x28] sm:$0xff] (%p241_p7), %v804_v0 }
  0x58   : > { %253 = vst [vmem:[#allocation7 + $0x30] sm:$0xff] (%p241_p7), %v804_v0  ;;  %254 = vst [vmem:[#allocation7 + $0x38] sm:$0xff] (%p241_p7), %v804_v0 }
  0x59   : > { %255 = vst [vmem:[#allocation7 + $0x40] sm:$0xff] (%p241_p7), %v804_v0  ;;  %256 = vst [vmem:[#allocation7 + $0x48] sm:$0xff] (%p241_p7), %v804_v0 }
  0x5a   : > { %257 = vst [vmem:[#allocation7 + $0x50] sm:$0xff] (%p241_p7), %v804_v0  ;;  %258 = vst [vmem:[#allocation7 + $0x58] sm:$0xff] (%p241_p7), %v804_v0 }
  0x5c PF: > { %v259_v1 = vld [vmem:[%s214_s30] sm:$0x3]  ;;  %v260_v2 = vld [vmem:[%s205_s8] sm:$0x3]  ;;  %v261_v3 = vld [vmem:[%s205_s8 + $0x2] sm:$0x3] }
  0x5d   : > { %v262_v4 = vld [vmem:[%s205_s8 + $0x4] sm:$0x3]  ;;  %v263_v5 = vld [vmem:[%s205_s8 + $0x6] sm:$0x3]  ;;  %vm264_vm0 = vcmask 1041408   ;;  %vm296_vm1 = vcmp.eq.f32.partialorder %v259_v1, 0.0 }
  0x5e   : > { %v265_v6 = vsel %vm264_vm0, %v260_v2, -inf  ;;  %v266_v7 = vsel %vm264_vm0, %v261_v3, -inf  ;;  %v267_v8 = vsel %vm264_vm0, %v262_v4, -inf  ;;  %v268_v9 = vsel %vm264_vm0, %v263_v5, -inf  ;;  %v311_v44 = vld [vmem:[#allocation7 + $0x20] sm:$0x1] }
  0x5f   : > { %v269_v10 = vmax.f32 %v265_v6, %v266_v7  ;;  %v270_v11 = vmax.f32 %v267_v8, %v268_v9  ;;  %vm333_vm2 = vcmp.eq.f32.partialorder %v259_v1, 1.0  ;;  %v805_v12 = vmov 0.0   ;;  %v349_v45 = vld [vmem:[#allocation7 + $0x28] sm:$0x1]  ;;  %v387_v54 = vld [vmem:[#allocation7 + $0x30] sm:$0x1] }
  0x60   : > { %v972_v13 = vsel %vm296_vm1, 1.0, %v805_v12  ;;  %v974_v14 = vsel %vm333_vm2, 1.0, %v805_v12  ;;  %vm371_vm3 = vcmp.eq.f32.partialorder %v259_v1, 2.0  ;;  %vm409_vm4 = vcmp.eq.f32.partialorder %v259_v1, 3.0  ;;  %v425_v62 = vld [vmem:[#allocation7 + $0x38] sm:$0x1] }
  0x61   : > { %v271_v15 = vmax.f32 %v269_v10, %v270_v11  ;;  %v312_v16 = vsel %vm264_vm0, %v972_v13, 0.0  ;;  %v350_v17 = vsel %vm264_vm0, %v974_v14, 0.0  ;;  %v980_v20 = vsel %vm371_vm3, 1.0, %v805_v12  ;;  %s806_s12 = smov [#allocation7]   ;;  %p1006_p9 = scmp.eq.s32.totalorder %s549_s15, 1 }
  0x62   : > { %v313_v18 = vrot.slane %v312_v16, 4  ;;  %v351_v19 = vrot.slane %v350_v17, 4  ;;  %v388_v27 = vsel %vm264_vm0, %v980_v20, 0.0  ;;  %v984_v28 = vsel %vm409_vm4, 1.0, %v805_v12  ;;  %s456_s20 = sshll.u32 %s806_s12, 4  ;;  %s457_s20 = int_to_ptr.vmem [resolvable:$true] %s456_s20 }
  0x63   : > { %v272_v21 = vsub.f32 %v260_v2, %v271_v15  ;;  %v273_v22 = vsub.f32 %v261_v3, %v271_v15  ;;  %v274_v23 = vsub.f32 %v262_v4, %v271_v15  ;;  %v275_v24 = vsub.f32 %v263_v5, %v271_v15  ;;  %s714_s6 = scalar_lea.vmem %s457_s20, 1536  ;;  %p721_p2 = scmp.lt.s32.totalorder %s457_s20, %s457_s20 }
  0x64   : > { %v314_v25 = vadd.f32 %v313_v18, %v312_v16  ;;  %v352_v26 = vadd.f32 %v351_v19, %v350_v17  ;;  %v389_v35 = vrot.slane %v388_v27, 4  ;;  %v426_v36 = vsel %vm264_vm0, %v984_v28, 0.0  ;;  %p715_p4 = scmp.ne.s32.totalorder %s457_s20, %s714_s6  ;;  %p722_p13 = scmp.lt.s32.totalorder %s714_s6, %s714_s6 }
  0x65   : > { %v276_v29 = vmul.f32 1.442695, %v272_v21  ;;  %v278_v30 = vmul.f32 1.442695, %v273_v22  ;;  %v280_v31 = vmul.f32 1.442695, %v274_v23 }
  0x66   : > { %v282_v32 = vmul.f32 1.442695, %v275_v24  ;;  %v315_v33 = vrot.slane %v314_v25, 2  ;;  %v353_v34 = vrot.slane %v352_v26, 2  ;;  %v390_v39 = vadd.f32 %v389_v35, %v388_v27  ;;  %p716_p0 = pnand %p715_p4, %p1006_p9  ;;  %p723_p3 = por %p722_p13, %p721_p2 }
  0x67   : > { %644 = vpow2.f32 %v276_v29  ;;  %v427_v40 = vrot.slane %v426_v36, 4 }
  0x68   : > { %646 = vpow2.f32 %v278_v30  ;;  %v316_v37 = vadd.f32 %v315_v33, %v314_v25  ;;  %v354_v38 = vadd.f32 %v353_v34, %v352_v26  ;;  %v391_v43 = vrot.slane %v390_v39, 2  ;;  %p717_p1 = pneg %p716_p0 }
  0x69   : > { %648 = vpow2.f32 %v280_v31  ;;  %v428_v46 = vadd.f32 %v427_v40, %v426_v36 }
  0x6a   : > { %650 = vpow2.f32 %v282_v32  ;;  %v317_v41 = vrot.slane %v316_v37, 1  ;;  %v355_v42 = vrot.slane %v354_v38, 1  ;;  %v392_v49 = vadd.f32 %v391_v43, %v390_v39  ;;  %p724_p5 = pnand %p723_p3, %p717_p1 }
  0x6b   : > { %v429_v50 = vrot.slane %v428_v46, 2 }
  0x6c   : > { %v318_v47 = vadd.f32 %v317_v41, %v316_v37  ;;  %v356_v48 = vadd.f32 %v355_v42, %v354_v38  ;;  %v393_v53 = vrot.slane %v392_v49, 1 }
  0x6d   : > { %v430_v55 = vadd.f32 %v429_v50, %v428_v46 }
  0x6e   : > { %v319_v51 = vadd.f32 %v318_v47, %v311_v44  ;;  %v357_v52 = vadd.f32 %v356_v48, %v349_v45  ;;  %v394_v56 = vadd.f32 %v393_v53, %v392_v49 }
  0x6f   : > { %v431_v58 = vrot.slane %v430_v55, 1 }
  0x70   : > { %320 = vst [vmem:[#allocation7 + $0x20] sm:$0x1] %v319_v51  ;;  %358 = vst [vmem:[#allocation7 + $0x28] sm:$0x1] %v357_v52  ;;  %v395_v61 = vadd.f32 %v394_v56, %v387_v54  ;;  %v299_v54 = vld [vmem:[#allocation7] sm:$0x1] }
  0x71   : > { %v645_v57 = vpop.eup %644  ;;  %v432_v1 = vadd.f32 %v431_v58, %v430_v55 }
  0x72   : > { %v647_v59 = vpop.eup %646  ;;  %v284_v60 = vsel %vm264_vm0, %v645_v57, 0.0  ;;  %396 = vst [vmem:[#allocation7 + $0x30] sm:$0x1] %v395_v61 }
  0x73   : > { %v649_v63 = vpop.eup %648  ;;  %v285_v0 = vsel %vm264_vm0, %v647_v59, 0.0  ;;  %v433_v6 = vadd.f32 %v432_v1, %v425_v62  ;;  %v360_v1 = vld [vmem:[#allocation7 + $0x48] sm:$0x1] }
  0x74   : > { %v651_v2 = vpop.eup %650  ;;  %v286_v3 = vadd.f32 %v285_v0, %v284_v60  ;;  %v287_v4 = vsel %vm264_vm0, %v649_v63, 0.0  ;;  %v322_v60 = vld [vmem:[#allocation7 + $0x40] sm:$0x1]  ;;  %v337_v0 = vld [vmem:[#allocation7 + $0x8] sm:$0x1] }
  0x75   : > { %v289_v5 = vsel %vm264_vm0, %v651_v2, 0.0  ;;  %434 = vst [vmem:[#allocation7 + $0x38] sm:$0x1] %v433_v6 }
  0x76   : > { %v288_v7 = vadd.f32 %v287_v4, %v286_v3 }
  0x78   : > { %v290_v8 = vadd.f32 %v289_v5, %v288_v7 }
  0x7a   : > { %652 = vrcp.f32 %v290_v8 }
  0x84   : > { %v653_v9 = vpop.eup %652 }
  0x85   : > { %v292_v10 = vmul.f32 %v653_v9, %v645_v57  ;;  %v293_v11 = vmul.f32 %v653_v9, %v647_v59  ;;  %v294_v12 = vmul.f32 %v653_v9, %v649_v63  ;;  %v295_v15 = vmul.f32 %v653_v9, %v651_v2 }
  0x87   : > { %v300_v16 = vmul.f32 %v972_v13, %v292_v10  ;;  %v323_v17 = vmul.f32 %v292_v10, %v292_v10  ;;  %v338_v18 = vmul.f32 %v974_v14, %v293_v11  ;;  %v361_v19 = vmul.f32 %v293_v11, %v293_v11  ;;  %v375_v10 = vld [vmem:[#allocation7 + $0x10] sm:$0x1] }
  0x88   : > { %v376_v21 = vmul.f32 %v980_v20, %v294_v12  ;;  %v399_v22 = vmul.f32 %v294_v12, %v294_v12  ;;  %v414_v23 = vmul.f32 %v984_v28, %v295_v15  ;;  %v437_v24 = vmul.f32 %v295_v15, %v295_v15  ;;  %v398_v12 = vld [vmem:[#allocation7 + $0x50] sm:$0x1] }
  0x89   : > { %v301_v25 = vsel %vm264_vm0, %v300_v16, 0.0  ;;  %v324_v26 = vsel %vm264_vm0, %v323_v17, 0.0  ;;  %v339_v27 = vsel %vm264_vm0, %v338_v18, 0.0  ;;  %v362_v29 = vsel %vm264_vm0, %v361_v19, 0.0 }
  0x8a   : > { %v302_v30 = vrot.slane %v301_v25, 4  ;;  %v325_v13 = vrot.slane %v324_v26, 4  ;;  %v340_v31 = vrot.slane %v339_v27, 4  ;;  %v363_v32 = vrot.slane %v362_v29, 4 }
  0x8b   : > { %v377_v14 = vsel %vm264_vm0, %v376_v21, 0.0  ;;  %v400_v20 = vsel %vm264_vm0, %v399_v22, 0.0  ;;  %v415_v33 = vsel %vm264_vm0, %v414_v23, 0.0  ;;  %v438_v28 = vsel %vm264_vm0, %v437_v24, 0.0  ;;  %v413_v23 = vld [vmem:[#allocation7 + $0x18] sm:$0x1] }
  0x8c   : > { %v303_v34 = vadd.f32 %v302_v30, %v301_v25  ;;  %v326_v35 = vadd.f32 %v325_v13, %v324_v26  ;;  %v341_v36 = vadd.f32 %v340_v31, %v339_v27  ;;  %v364_v37 = vadd.f32 %v363_v32, %v362_v29  ;;  %v436_v24 = vld [vmem:[#allocation7 + $0x58] sm:$0x1] }
  0x8d   : > { %v378_v38 = vrot.slane %v377_v14, 4  ;;  %v401_v39 = vrot.slane %v400_v20, 4  ;;  %v416_v40 = vrot.slane %v415_v33, 4  ;;  %v439_v41 = vrot.slane %v438_v28, 4 }
  0x8e   : > { %v304_v42 = vrot.slane %v303_v34, 2  ;;  %v327_v43 = vrot.slane %v326_v35, 2  ;;  %v342_v44 = vrot.slane %v341_v36, 2  ;;  %v365_v45 = vrot.slane %v364_v37, 2 }
  0x8f   : > { %v379_v46 = vadd.f32 %v378_v38, %v377_v14  ;;  %v402_v47 = vadd.f32 %v401_v39, %v400_v20  ;;  %v417_v48 = vadd.f32 %v416_v40, %v415_v33  ;;  %v440_v49 = vadd.f32 %v439_v41, %v438_v28 }
  0x90   : > { %v305_v50 = vadd.f32 %v304_v42, %v303_v34  ;;  %v328_v51 = vadd.f32 %v327_v43, %v326_v35  ;;  %v343_v52 = vadd.f32 %v342_v44, %v341_v36  ;;  %v366_v53 = vadd.f32 %v365_v45, %v364_v37 }
  0x91   : > { %v380_v55 = vrot.slane %v379_v46, 2  ;;  %v403_v56 = vrot.slane %v402_v47, 2  ;;  %v418_v57 = vrot.slane %v417_v48, 2  ;;  %v441_v58 = vrot.slane %v440_v49, 2 }
  0x92   : > { %v306_v59 = vrot.slane %v305_v50, 1  ;;  %v329_v61 = vrot.slane %v328_v51, 1  ;;  %v344_v62 = vrot.slane %v343_v52, 1  ;;  %v367_v63 = vrot.slane %v366_v53, 1 }
  0x93   : > { %v381_v2 = vadd.f32 %v380_v55, %v379_v46  ;;  %v404_v3 = vadd.f32 %v403_v56, %v402_v47  ;;  %v419_v4 = vadd.f32 %v418_v57, %v417_v48  ;;  %v442_v5 = vadd.f32 %v441_v58, %v440_v49 }
  0x94   : > { %v307_v6 = vadd.f32 %v306_v59, %v305_v50  ;;  %v330_v7 = vadd.f32 %v329_v61, %v328_v51  ;;  %v345_v8 = vadd.f32 %v344_v62, %v343_v52  ;;  %v368_v9 = vadd.f32 %v367_v63, %v366_v53 }
  0x95   : > { %v382_v11 = vrot.slane %v381_v2, 1  ;;  %v405_v15 = vrot.slane %v404_v3, 1  ;;  %v420_v16 = vrot.slane %v419_v4, 1  ;;  %v443_v17 = vrot.slane %v442_v5, 1 }
  0x96   : > { %v308_v18 = vadd.f32 %v307_v6, %v299_v54  ;;  %v331_v19 = vadd.f32 %v330_v7, %v322_v60  ;;  %v346_v21 = vadd.f32 %v345_v8, %v337_v0  ;;  %v369_v22 = vadd.f32 %v368_v9, %v360_v1 }
  0x97   : > { %v383_v25 = vadd.f32 %v382_v11, %v381_v2  ;;  %v406_v26 = vadd.f32 %v405_v15, %v404_v3  ;;  %v421_v27 = vadd.f32 %v420_v16, %v419_v4  ;;  %v444_v29 = vadd.f32 %v443_v17, %v442_v5 }
  0x98   : > { %309 = vst [vmem:[#allocation7] sm:$0x1] %v308_v18  ;;  %332 = vst [vmem:[#allocation7 + $0x40] sm:$0x1] %v331_v19 }
  0x99   : > { %347 = vst [vmem:[#allocation7 + $0x8] sm:$0x1] %v346_v21  ;;  %370 = vst [vmem:[#allocation7 + $0x48] sm:$0x1] %v369_v22  ;;  %v384_v30 = vadd.f32 %v383_v25, %v375_v10  ;;  %v407_v13 = vadd.f32 %v406_v26, %v398_v12  ;;  %v422_v31 = vadd.f32 %v421_v27, %v413_v23 }
  0x9a   : > { %v445_v32 = vadd.f32 %v444_v29, %v436_v24 }
  0x9b   : > { %385 = vst [vmem:[#allocation7 + $0x10] sm:$0x1] %v384_v30  ;;  %408 = vst [vmem:[#allocation7 + $0x50] sm:$0x1] %v407_v13 }
  0x9c   : > { %423 = vst [vmem:[#allocation7 + $0x18] sm:$0x1] %v422_v31  ;;  %446 = vst [vmem:[#allocation7 + $0x58] sm:$0x1] %v445_v32 }
  0x9d   : > { %727 = shalt.err (!%p724_p5)
}
  0x9e   : > { %s728_s27 = scalar_lea.hbm %s1052_s2, 1536 }
  0x9f   : > { %p729_p6 = scmp.ne.s32.totalorder %s1052_s2, %s728_s27  ;;  %p734_p8 = scmp.lt.u32.totalorder %s728_s27, %s1052_s2 }
  0xa1   : > { %p730_p10 = pnand %p729_p6, %p1006_p9 }
  0xa3   : > { %p731_p12 = pneg %p730_p10 }
  0xa5   : > { %p736_p11 = pnand %p734_p8, %p731_p12 }
  0xa7   : > { %739 = shalt.err (!%p736_p11)
}
  0xa8   : > { %s807_s22 = smov 128   ;;  %s808_s24 = smov 8  }
  0xa9   : > { %576 = dma.vmem_to_hbm [thread:$0]  (%p1006_p9), %s457_s20, 1536, %s1052_s2, [#allocation4], %s807_s22, %s807_s22, %s808_s24  }
  0xaa   : > { %773 = dma.done.wait (%p1006_p9), [#allocation4], 1536  }
  0xab   : > { %775 = vsyncadd (%p1006_p9), [#allocation4], 4294965760 }
  0xac PF: > { %s19_s14 = sadd.s32 1, %s798_s14   ;;  %s1061_s9 = smov %s782_s10 }
  0xad   : > { %p16_p7 = scmp.ge.s32.totalorder %s19_s14, 4   ;;  %s1062_s10 = smov %s786_s11 }
  0xae   : > { %s1063_s11 = smov %s875_s21  ;;  %s1064_s12 = smov %s794_s13 }
  0xaf   : > { %s1065_s13 = smov %s1067_s16  ;;  %18 = sbr.rel (!%p16_p7) target bundleno = 7 (0x7), region = 94 }
  0xb6   :  { %472 = vsyncpa [#allocation3], 1 }
  0xb7   :  { %474 = vsyncpa [#allocation3 + $0x1], 1 }
  0xb8   :  { %475 = vsyncpa [#allocation6], 1 }
  0xb9   :  { %477 = vsyncpa [#allocation6 + $0x1], 1 }
  0xba   :  { %478 = vsyncpa [#allocation4], 1 }
  0xbb   :  { %480 = vsyncpa [#allocation4 + $0x1], 1 }

</bundles_post_ra>
